<compile_context>
chip_gen: v7x
topology: tpu7x:2x2x1
jax: 0.10.0
libtpu: 0.0.40
codegen_flags: <defaults>
</compile_context>

<pallas_src>
import math
from functools import partial

import jax
import jax.numpy as jnp
import numpy as np
from jax.experimental import pallas as pl
from jax.experimental.pallas import tpu as pltpu

# TODO(synk): RMSNorm eps is not visible in the provided module source; assume
# the common default 1e-6.
RMSNORM_EPS = 1e-6
_MASK_VALUE = -0.7 * float(np.finfo(np.float32).max)


def _round_up(x, m):
    return ((x + m - 1) // m) * m


def _tile(total_len, target):
    """Tile size: multiple of 8, <= padded length, >= 8."""
    t = min(max(int(target), 8), _round_up(total_len, 8))
    return max(8, (t // 8) * 8)


def _pad_to(x, target_shape):
    pads = [(0, t - s) for s, t in zip(x.shape, target_shape)]
    if any(hi for _, hi in pads):
        x = jnp.pad(x, pads)
    return x


def _default_vmem_limit():
    # v5e/v6e: 128 MiB VMEM per core, v7x: 64 MiB.  Query the hardware and keep
    # ~1/8 headroom for compiler-internal scratch instead of hardcoding a value
    # that equals v7x's entire physical VMEM.
    try:
        info = pltpu.get_tpu_info()
        phys = getattr(info, "vmem_capacity_bytes", None)
        if phys:
            return int(min(max(32 * 1024 * 1024, int(phys) * 7 // 8),
                           128 * 1024 * 1024))
    except Exception:
        pass
    return 48 * 1024 * 1024  # safe on every generation


def _rmsnorm_f32(x_f32, gamma):
    var = jnp.mean(x_f32 * x_f32, axis=-1, keepdims=True)
    return x_f32 * jax.lax.rsqrt(var + RMSNORM_EPS) * gamma.astype(jnp.float32)


# ---------------------------------------------------------------------------
# Projection kernel: x @ W for 1..3 fused projections, RMSNorm on the first
# g_ref.shape[0] outputs, head-split (L, inner) -> (H, L, Dh) on the way out.
# ---------------------------------------------------------------------------
def proj_heads_kernel(x_ref, w_ref, g_ref, *out_refs):
    inner = g_ref.shape[-1]
    head_dim = out_refs[0].shape[-1]
    norm_count = g_ref.shape[0]
    # MXU matmul in the activation dtype, fp32 accumulation.
    y = jnp.dot(x_ref[...], w_ref[...], preferred_element_type=jnp.float32)
    for j, oref in enumerate(out_refs):
        yj = y[:, j * inner:(j + 1) * inner]          # 128-aligned lane slice
        if j < norm_count:
            yj = _rmsnorm_f32(yj, g_ref[j:j + 1, :])
        for h in range(oref.shape[0]):                # head-split paid ONCE here
            oref[h] = yj[:, h * head_dim:(h + 1) * head_dim].astype(oref.dtype)


# ---------------------------------------------------------------------------
# Flash attention (online softmax over KV tiles) fused with o_proj.
# Blocks are head-split (H, t, Dh): batched einsums, no mid-vreg channel slices
# in the inner loop.  1/sqrt(Dh) is pre-folded into q_norm gamma.
# ---------------------------------------------------------------------------
def flash_oproj_kernel(q_ref, k_ref, v_ref, wo_ref, out_ref,
                       m_ref, l_ref, acc_ref, attn_ref, *, kv_valid):
    kv_id = pl.program_id(2)
    num_heads, _, head_dim = acc_ref.shape
    tkv = k_ref.shape[1]

    @pl.when(kv_id == 0)
    def _init():
        m_ref[...] = jnp.full(m_ref.shape, -jnp.inf, dtype=m_ref.dtype)
        l_ref[...] = jnp.zeros(l_ref.shape, l_ref.dtype)
        acc_ref[...] = jnp.zeros(acc_ref.shape, acc_ref.dtype)

    q = q_ref[...]                                   # (H, tq,  Dh)
    k = k_ref[...]                                   # (H, tkv, Dh)
    v = v_ref[...]                                   # (H, tkv, Dh)

    s = jnp.einsum("hqd,hkd->hqk", q, k,
                   preferred_element_type=jnp.float32)       # (H, tq, tkv)
    if kv_valid is not None:   # static flag: only emitted when Lk was padded
        col = jax.lax.broadcasted_iota(jnp.int32, s.shape, dimension=2)
        s = jnp.where(kv_id * tkv + col < kv_valid, s, _MASK_VALUE)

    m_prev = m_ref[...]                                        # (H, tq, 1)
    m_new = jnp.maximum(m_prev, jnp.max(s, axis=-1, keepdims=True))
    alpha = jnp.exp(m_prev - m_new)
    p = jnp.exp(s - m_new)                                     # fp32
    l_ref[...] = alpha * l_ref[...] + jnp.sum(p, axis=-1, keepdims=True)
    pv = jnp.einsum("hqk,hkd->hqd", p.astype(v.dtype), v,
                    preferred_element_type=jnp.float32)
    acc_ref[...] = alpha * acc_ref[...] + pv
    m_ref[...] = m_new

    @pl.when(kv_id == pl.num_programs(2) - 1)
    def _finalize():
        inv_l = pl.reciprocal(l_ref[...], approx=True)         # EUP slot
        attn = acc_ref[...] * inv_l                            # (H, tq, Dh) f32
        # Assemble a lane-dense (tq, inner) activation once per q-tile, then do
        # ONE o_proj matmul with a full `inner`-deep MXU contraction.
        for h in range(num_heads):
            attn_ref[:, h * head_dim:(h + 1) * head_dim] = \
                attn[h].astype(attn_ref.dtype)
        out_ref[...] = jnp.dot(attn_ref[...], wo_ref[...],
                               preferred_element_type=jnp.float32
                               ).astype(out_ref.dtype)


# ---------------------------------------------------------------------------
# Wrapper
# ---------------------------------------------------------------------------
def attention_forward(inputs_q, inputs_kv, params, *, num_heads, head_dim,
                      q_tile=512, kv_tile=512, kv_buffers=2,
                      vmem_limit_bytes=None,
                      attention_mask=None, rope_pos_embed=None,
                      cu_seqlens_q=None, cu_seqlens_k=None, dropout_p=0.0):
    """Dense (non-varlen) Attention.forward, bias=False, qk_normalization=True.

    Tile sweeping: raise q_tile before kv_tile (K/V are re-streamed once per
    q-tile); shrink both on v7x (64 MiB VMEM) or for very large head counts
    (the fp32 (H, tq, tkv) score block must fit VMEM)."""
    # Unsupported module features -> hard assert instead of silently wrong results.
    assert attention_mask is None and rope_pos_embed is None, \
        "TODO(synk): rope / attention_mask paths not implemented"
    assert cu_seqlens_q is None and cu_seqlens_k is None, \
        "TODO(synk): varlen (cu_seqlens) path not implemented"
    assert dropout_p == 0.0, "dropout not implemented (eval path only)"

    self_attn = (inputs_kv is None) or (inputs_kv is inputs_q)
    if inputs_kv is None:
        inputs_kv = inputs_q
    B, Lq, Cq = inputs_q.shape
    _, Lk, Ckv = inputs_kv.shape
    inner = num_heads * head_dim
    dtype = inputs_q.dtype
    out_dim = params["wo"].shape[0]
    assert params["wq"].shape == (inner, Cq)
    assert params["wo"].shape == (out_dim, inner)

    if vmem_limit_bytes is None:
        vmem_limit_bytes = _default_vmem_limit()

    # --- lane-dense padding (channels -> 128 multiples, seq -> tile multiple) --
    Cq_pad = _round_up(Cq, 128)
    Ckv_pad = _round_up(Ckv, 128)
    out_pad = _round_up(out_dim, 128)

    tq = _tile(Lq, q_tile)
    Lq_pad = _round_up(Lq, tq)
    nq = Lq_pad // tq
    if self_attn:
        Lk_pad = Lq_pad
        tkv = _tile(Lk_pad, kv_tile)
        while Lk_pad % tkv:            # keep tkv a multiple-of-8 divisor of Lk_pad
            tkv -= 8
        kv_valid = Lq if Lq_pad != Lq else None
    else:
        tkv = _tile(Lk, kv_tile)
        Lk_pad = _round_up(Lk, tkv)
        kv_valid = Lk if Lk_pad != Lk else None
    nkv = Lk_pad // tkv

    # --- one-time weight transforms (pre-transposed, padded, scale folded) ----
    scale = 1.0 / math.sqrt(head_dim)          # torch SDPA default scaling
    wq_p = _pad_to(params["wq"].T.astype(dtype), (Cq_pad, inner))
    wk_p = _pad_to(params["wk"].T.astype(dtype), (Ckv_pad, inner))
    wv_p = _pad_to(params["wv"].T.astype(dtype), (Ckv_pad, inner))
    wo_p = _pad_to(params["wo"].T.astype(dtype), (inner, out_pad))
    qg = (params["q_norm_w"].astype(jnp.float32) * scale).reshape(1, inner)
    kg = params["k_norm_w"].astype(jnp.float32).reshape(1, inner)

    xq = _pad_to(inputs_q, (B, Lq_pad, Cq_pad)).astype(dtype)
    itemsize = int(np.dtype(dtype).itemsize)
    hd_shape = lambda L: jax.ShapeDtypeStruct((B, num_heads, L, head_dim), dtype)

    cp_proj = pltpu.CompilerParams(dimension_semantics=("parallel", "parallel"),
                                   vmem_limit_bytes=vmem_limit_bytes)

    def run_proj(x_pad, w, g, t, n_grid, n_out):
        L_pad, C_pad = x_pad.shape[1], x_pad.shape[2]
        cost = pl.CostEstimate(
            flops=int(2 * B * L_pad * C_pad * w.shape[-1]),
            transcendentals=0,
            bytes_accessed=int((int(x_pad.size) + int(w.size)) * itemsize
                               + n_out * B * L_pad * inner * itemsize))
        return pl.pallas_call(
            proj_heads_kernel,
            out_shape=tuple(hd_shape(L_pad) for _ in range(n_out)),
            grid=(B, n_grid),
            in_specs=[
                pl.BlockSpec((None, t, C_pad), lambda b, ti: (b, ti, 0)),
                pl.BlockSpec(w.shape, lambda b, ti: (0, 0)),
                pl.BlockSpec(g.shape, lambda b, ti: (0, 0)),
            ],
            out_specs=tuple(
                pl.BlockSpec((None, num_heads, t, head_dim),
                             lambda b, ti: (b, 0, ti, 0))
                for _ in range(n_out)),
            compiler_params=cp_proj,
            cost_estimate=cost,
        )(x_pad, w, g)

    # --- projections (+ RMSNorm, head-split) -----------------------------------
    if self_attn:
        # Fused qkv: x read from HBM once, single weight stream.
        w_qkv = jnp.concatenate([wq_p, wk_p, wv_p], axis=1)     # (C_pad, 3*inner)
        g_qk = jnp.concatenate([qg, kg], axis=0)                # (2, inner)
        q, k, v = run_proj(xq, w_qkv, g_qk, tq, nq, 3)
    else:
        xkv = _pad_to(inputs_kv, (B, Lk_pad, Ckv_pad)).astype(dtype)
        (q,) = run_proj(xq, wq_p, qg, tq, nq, 1)
        w_kv = jnp.concatenate([wk_p, wv_p], axis=1)            # (C_pad, 2*inner)
        k, v = run_proj(xkv, w_kv, kg, tkv, nkv, 2)

    # --- flash attention + o_proj ----------------------------------------------
    cost_attn = pl.CostEstimate(
        flops=int(4 * B * Lq_pad * Lk_pad * inner + 2 * B * Lq_pad * inner * out_pad),
        transcendentals=int(B * num_heads * Lq_pad * Lk_pad),
        bytes_accessed=int(itemsize * (B * Lq_pad * inner
                                       + 2 * B * Lk_pad * inner * nq
                                       + inner * out_pad
                                       + B * Lq_pad * out_pad)))

    kv_block = (None, num_heads, tkv, head_dim)
    kv_map = lambda b, qi, kvi: (b, 0, kvi, 0)
    if kv_buffers and kv_buffers != 2:
        # Deeper K/V buffering (e.g. 3 on v5e) if xprof shows exposed DMA.
        kv_spec = pl.BlockSpec(kv_block, kv_map, pipeline_mode=pl.Buffered(kv_buffers))
    else:
        kv_spec = pl.BlockSpec(kv_block, kv_map)

    out = pl.pallas_call(
        partial(flash_oproj_kernel, kv_valid=kv_valid),
        out_shape=jax.ShapeDtypeStruct((B, Lq_pad, out_pad), dtype),
        grid=(B, nq, nkv),
        in_specs=[
            pl.BlockSpec((None, num_heads, tq, head_dim),
                         lambda b, qi, kvi: (b, 0, qi, 0)),
            kv_spec,
            kv_spec,
            pl.BlockSpec((inner, out_pad), lambda b, qi, kvi: (0, 0)),
        ],
        out_specs=pl.BlockSpec((None, tq, out_pad), lambda b, qi, kvi: (b, qi, 0)),
        scratch_shapes=[
            pltpu.VMEM((num_heads, tq, 1), jnp.float32),          # running max m
            pltpu.VMEM((num_heads, tq, 1), jnp.float32),          # running sum l
            pltpu.VMEM((num_heads, tq, head_dim), jnp.float32),   # fp32 accumulator
            pltpu.VMEM((tq, inner), dtype),                       # lane-dense attn
        ],
        compiler_params=pltpu.CompilerParams(
            dimension_semantics=("parallel", "parallel", "arbitrary"),
            vmem_limit_bytes=vmem_limit_bytes),
        cost_estimate=cost_attn,
    )(q, k, v, wo_p)

    return out[:, :Lq, :out_dim]


# ---------------------------------------------------------------------------
# Pure-JAX reference for correctness check
# ---------------------------------------------------------------------------
def attention_ref(inputs_q, inputs_kv, params, *, num_heads, head_dim):
    if inputs_kv is None:
        inputs_kv = inputs_q
    B, Lq, _ = inputs_q.shape
    Lk = inputs_kv.shape[1]
    inner = num_heads * head_dim

    def rms(x, w):
        var = jnp.mean(x * x, axis=-1, keepdims=True)
        return x * jax.lax.rsqrt(var + RMSNORM_EPS) * w

    q = rms(inputs_q @ params["wq"].T, params["q_norm_w"])
    k = rms(inputs_kv @ params["wk"].T, params["k_norm_w"])
    v = inputs_kv @ params["wv"].T
    qh = q.reshape(B, Lq, num_heads, head_dim).transpose(0, 2, 1, 3)
    kh = k.reshape(B, Lk, num_heads, head_dim).transpose(0, 2, 1, 3)
    vh = v.reshape(B, Lk, num_heads, head_dim).transpose(0, 2, 1, 3)
    s = jnp.einsum("bhqd,bhkd->bhqk", qh, kh) / math.sqrt(head_dim)
    p = jax.nn.softmax(s, axis=-1)
    o = jnp.einsum("bhqk,bhkd->bhqd", p, vh)
    o = o.transpose(0, 2, 1, 3).reshape(B, Lq, inner)
    return o @ params["wo"].T


if __name__ == "__main__":
    # Small config consistent with the module defaults:
    #   query_dim = cross_attention_dim = 32, heads = 2, dim_head = 64
    #   -> inner_dim = 128, out_dim = query_dim = 32, bias = False.
    # Lq/Lk deliberately NOT multiples of 8 to exercise the pad + key-mask path.
    B, Lq, Lk = 2, 10, 12
    query_dim = 32
    heads, dim_head = 2, 64
    inner_dim = heads * dim_head
    out_dim = query_dim

    key = jax.random.PRNGKey(0)
    ks = jax.random.split(key, 8)
    sc = 0.05
    params = {
        "wq": sc * jax.random.normal(ks[0], (inner_dim, query_dim), jnp.float32),
        "wk": sc * jax.random.normal(ks[1], (inner_dim, query_dim), jnp.float32),
        "wv": sc * jax.random.normal(ks[2], (inner_dim, query_dim), jnp.float32),
        "wo": sc * jax.random.normal(ks[3], (out_dim, inner_dim), jnp.float32),
        "q_norm_w": 1.0 + 0.1 * jax.random.normal(ks[6], (inner_dim,), jnp.float32),
        "k_norm_w": 1.0 + 0.1 * jax.random.normal(ks[7], (inner_dim,), jnp.float32),
    }
    inputs_q = jax.random.normal(ks[4], (B, Lq, query_dim), jnp.float32)
    inputs_kv = jax.random.normal(ks[5], (B, Lk, query_dim), jnp.float32)

    # 1) cross-attention, default tiles (padded seq lengths + key masking)
    ref = attention_ref(inputs_q, inputs_kv, params,
                        num_heads=heads, head_dim=dim_head)
    out = attention_forward(inputs_q, inputs_kv, params,
                            num_heads=heads, head_dim=dim_head)
    out = jax.block_until_ready(out)
    np.testing.assert_allclose(np.asarray(out), np.asarray(ref),
                               rtol=2e-3, atol=2e-3)

    # 2) force multiple q/kv tiles to exercise the online-softmax reduction path
    out2 = attention_forward(inputs_q, inputs_kv, params,
                             num_heads=heads, head_dim=dim_head,
                             q_tile=8, kv_tile=8)
    out2 = jax.block_until_ready(out2)
    np.testing.assert_allclose(np.asarray(out2), np.asarray(ref),
                               rtol=2e-3, atol=2e-3)

    # 3) self-attention (inputs_kv=None) -> fused qkv projection path
    ref_sa = attention_ref(inputs_q, None, params,
                           num_heads=heads, head_dim=dim_head)
    out3 = attention_forward(inputs_q, None, params,
                             num_heads=heads, head_dim=dim_head)
    out3 = jax.block_until_ready(out3)
    np.testing.assert_allclose(np.asarray(out3), np.asarray(ref_sa),
                               rtol=2e-3, atol=2e-3)

    # TODO(synk): rope, attention_mask, varlen (cu_seqlens), dropout, lazy_repeat,
    # and sequence-parallel gather/split paths are not implemented.
    print("KERNEL_OK")
</pallas_src>

<mosaic_0001>
module attributes {stable_mosaic.version = 11 : i64} {
  func.func @proj_heads_kernel(%arg0: i32, %arg1: i32, %arg2: memref<1x16x128xf32, #tpu.memory_space<vmem>>, %arg3: memref<128x128xf32, #tpu.memory_space<vmem>>, %arg4: memref<1x128xf32, #tpu.memory_space<vmem>>, %arg5: memref<1x2x16x64xf32, #tpu.memory_space<vmem>>) attributes {dimension_semantics = [#tpu.dimension_semantics<parallel>, #tpu.dimension_semantics<parallel>], iteration_bounds = array<i64: 2, 1>, scalar_prefetch = 0 : i64, scratch_operands = 0 : i64, tpu.core_type = #tpu.core_type<tc>, window_params = [{transform_indices = @transform_0, window_bounds = array<i64: 1, 16, 128>}, {pipeline_mode = #tpu.pipeline_mode<synchronous>, transform_indices = @transform_1, window_bounds = array<i64: 128, 128>}, {pipeline_mode = #tpu.pipeline_mode<synchronous>, transform_indices = @transform_2, window_bounds = array<i64: 1, 128>}, {transform_indices = @transform_3, window_bounds = array<i64: 1, 2, 16, 64>}]} {
    %c0 = arith.constant 0 : index
    %c0_0 = arith.constant 0 : index
    %c0_1 = arith.constant 0 : index
    %0 = vector.load %arg2[%c0, %c0_0, %c0_1] : memref<1x16x128xf32, #tpu.memory_space<vmem>>, vector<1x16x128xf32>
    %1 = vector.shape_cast %0 : vector<1x16x128xf32> to vector<16x128xf32>
    %c0_2 = arith.constant 0 : index
    %c0_3 = arith.constant 0 : index
    %2 = vector.load %arg3[%c0_2, %c0_3] : memref<128x128xf32, #tpu.memory_space<vmem>>, vector<128x128xf32>
    %cst = arith.constant dense<0.000000e+00> : vector<16x128xf32>
    %3 = tpu.matmul %1, %2, %cst {dimension_numbers = #tpu.dot_dimension_numbers<[1], [0], [0], [1], [0, 0, 1, 1], [], []>} : vector<16x128xf32>, vector<128x128xf32>, vector<16x128xf32> -> vector<16x128xf32>
    %c0_4 = arith.constant 0 : index
    %c0_5 = arith.constant 0 : index
    %4 = vector.load %arg4[%c0_4, %c0_5] : memref<1x128xf32, #tpu.memory_space<vmem>>, vector<1x128xf32>
    %5 = arith.mulf %3, %3 : vector<16x128xf32>
    %cst_6 = arith.constant dense<0.000000e+00> : vector<16xf32>
    %6 = vector.multi_reduction <add>, %5, %cst_6 [1] : vector<16x128xf32> to vector<16xf32>
    %7 = vector.shape_cast %6 : vector<16xf32> to vector<16x1xf32>
    %cst_7 = arith.constant 1.280000e+02 : f32
    %8 = vector.broadcast %cst_7 : f32 to vector<16x1xf32>
    %9 = arith.divf %7, %8 : vector<16x1xf32>
    %cst_8 = arith.constant 9.99999997E-7 : f32
    %10 = vector.broadcast %cst_8 : f32 to vector<16x1xf32>
    %11 = arith.addf %9, %10 : vector<16x1xf32>
    %12 = math.rsqrt %11 : vector<16x1xf32>
    %13 = vector.broadcast %12 : vector<16x1xf32> to vector<16x128xf32>
    %14 = arith.mulf %3, %13 : vector<16x128xf32>
    %15 = vector.broadcast %4 : vector<1x128xf32> to vector<16x128xf32>
    %16 = arith.mulf %14, %15 : vector<16x128xf32>
    %17 = vector.extract_strided_slice %16 {offsets = [0, 0], sizes = [16, 64], strides = [1, 1]} : vector<16x128xf32> to vector<16x64xf32>
    %c0_9 = arith.constant 0 : index
    %c0_10 = arith.constant 0 : index
    %c0_11 = arith.constant 0 : index
    %c0_12 = arith.constant 0 : index
    %18 = vector.load %arg5[%c0_9, %c0_10, %c0_11, %c0_12] : memref<1x2x16x64xf32, #tpu.memory_space<vmem>>, vector<1x1x16x64xf32>
    %19 = vector.shape_cast %18 : vector<1x1x16x64xf32> to vector<16x64xf32>
    %20 = vector.shape_cast %17 : vector<16x64xf32> to vector<1x1x16x64xf32>
    tpu.vector_store %arg5[%c0_9, %c0_10, %c0_11, %c0_12], %20 {strides = array<i32>} : memref<1x2x16x64xf32, #tpu.memory_space<vmem>>, vector<1x1x16x64xf32>,
    %21 = vector.extract_strided_slice %16 {offsets = [0, 64], sizes = [16, 64], strides = [1, 1]} : vector<16x128xf32> to vector<16x64xf32>
    %c0_13 = arith.constant 0 : index
    %c1 = arith.constant 1 : index
    %c0_14 = arith.constant 0 : index
    %c0_15 = arith.constant 0 : index
    %22 = vector.load %arg5[%c0_13, %c1, %c0_14, %c0_15] : memref<1x2x16x64xf32, #tpu.memory_space<vmem>>, vector<1x1x16x64xf32>
    %23 = vector.shape_cast %22 : vector<1x1x16x64xf32> to vector<16x64xf32>
    %24 = vector.shape_cast %21 : vector<16x64xf32> to vector<1x1x16x64xf32>
    tpu.vector_store %arg5[%c0_13, %c1, %c0_14, %c0_15], %24 {strides = array<i32>} : memref<1x2x16x64xf32, #tpu.memory_space<vmem>>, vector<1x1x16x64xf32>,
    return
  }
  func.func @transform_0(%arg0: i32, %arg1: i32) -> (i32, i32, i32) {
    %c0_i32 = arith.constant 0 : i32
    %c0_i32_0 = arith.constant 0 : i32
    return %arg0, %arg1, %c0_i32 : i32, i32, i32
  }
  func.func @transform_1(%arg0: i32, %arg1: i32) -> (i32, i32) {
    %c0_i32 = arith.constant 0 : i32
    %c0_i32_0 = arith.constant 0 : i32
    %c0_i32_1 = arith.constant 0 : i32
    return %c0_i32, %c0_i32_0 : i32, i32
  }
  func.func @transform_2(%arg0: i32, %arg1: i32) -> (i32, i32) {
    %c0_i32 = arith.constant 0 : i32
    %c0_i32_0 = arith.constant 0 : i32
    %c0_i32_1 = arith.constant 0 : i32
    return %c0_i32, %c0_i32_0 : i32, i32
  }
  func.func @transform_3(%arg0: i32, %arg1: i32) -> (i32, i32, i32, i32) {
    %c0_i32 = arith.constant 0 : i32
    %c0_i32_0 = arith.constant 0 : i32
    %c0_i32_1 = arith.constant 0 : i32
    return %arg0, %c0_i32, %arg1, %c0_i32_0 : i32, i32, i32, i32
  }
}

</mosaic_0001>

<bundles_post_ra>
// kernel: tpu_custom_call.1
= control target key start
LH: loop header
LB: loop body
LE: loop exit
PB: predicated region body
PF: predicated region fallthrough
CT: control target
= control target key end

     0   :  { %8 = vsyncpa [#allocation3], 0  ;;  %s1068_s0 = inlined_call_operand.hbm [shape: f32[2,16,128], index: 0, kind: input, shape index: {}]   ;;  %s1069_s1 = inlined_call_operand.hbm [shape: f32[128,128], index: 1, kind: input, shape index: {}]   ;;  %s1070_s2 = inlined_call_operand.vmem [shape: f32[1,128], index: 2, kind: input, shape index: {}]   ;;  %s1071_s3 = inlined_call_operand.hbm [shape: f32[2,2,16,64], index: 3, kind: output, shape index: {}]  }
   0x1   :  { %10 = vsyncpa [#allocation3 + $0x1], 0 }
   0x2   :  { %11 = vsyncpa [#allocation6], 0 }
   0x3   :  { %12 = vsyncpa [#allocation4], 0 }
   0x4   :  { %14 = vsyncpa [#allocation4 + $0x1], 0  ;;  %s831_s12 = smov 0   ;;  %s833_s13 = smov 0  }
   0x5   :  { %s835_s14 = smov 0   ;;  %s837_s15 = smov 0  }
   0x6   :  { %s839_s16 = smov 0   ;;  %s841_s17 = smov 0  }
   0x7 LB: > { %s468_s18 = sadd.s32 4294967295, %s801_s17   ;;  %s469_s19 = sadd.s32 4294967294, %s801_s17   ;;  %s801_s17 = sphi %s841_s17, %s20_s17   ;;  %s797_s16 = sphi %s839_s16, %s1095_s16   ;;  %s793_s15 = sphi %s837_s15, %s1094_s15   ;;  %s789_s14 = sphi %s835_s14, %s1093_s14   ;;  %s785_s13 = sphi %s833_s13, %s1092_s13   ;;  %s781_s12 = sphi %s831_s12, %s1091_s12  }
   0x8   : > { %p54_p0 = scmp.ne.s32.totalorder %s785_s13, %s781_s12  ;;  %p865_p1 = scmp.eq.s32.totalorder %s468_s18, 0 }
   0x9   : > { %p869_p2 = scmp.eq.s32.totalorder %s468_s18, 1  ;;  %p128_p3 = scmp.eq.s32.totalorder %s469_s19, 1 }
   0xa   : > { %s1076_s20 = scalar_select %p865_p1, 1, 0 }
   0xb   : > { %s1077_s21 = scalar_select %p869_p2, 1, 0 }
   0xc   : > { %p875_p4 = por %p865_p1, %p54_p0  ;;  %p470_p5 = scmp.ge.s32.totalorder %s801_s17, 1 }
   0xd   : > { %p880_p6 = por %p128_p3, %p54_p0  ;;  %p135_p7 = scmp.lt.s32.totalorder %s801_s17, 3 }
   0xe   : > { %s1078_s22 = scalar_select %p875_p4, 1, 0 }
   0xf   : > { %s1079_s23 = scalar_select %p880_p6, 1, 0 }
  0x10   : > { %p885_p8 = pnand %p470_p5, %p135_p7  ;;  %s803_s25 = smov [#allocation5]  }
  0x11   : > { %s147_s26 = sshll.u32 %s803_s25, 4  ;;  %s32_s28 = sadd.s32 1, %s797_s16  ;;  %s148_s26 = int_to_ptr.vmem [resolvable:$true] %s147_s26 }
  0x12   : > { %s1080_s24 = scalar_select %p885_p8, 1, 0 }
  0x13   : > { %p583_p9 = pneg %p885_p8  ;;  %s657_s4 = scalar_lea.hbm %s1069_s1, 2048 }
  0x14   : > { %p658_p12 = scmp.ne.s32.totalorder %s1069_s1, %s657_s4  ;;  %p664_p5 = scmp.lt.u32.totalorder %s657_s4, %s1069_s1 }
  0x15   : > { %p894_p11 = pnand %p583_p9, %p865_p1 }
  0x17   : > { %p659_p13 = pneg %p894_p11 }
  0x19   : > { %p660_p0 = pnand %p659_p13, %p658_p12 }
  0x1b   : > { %p661_p3 = pneg %p660_p0 }
  0x1d   : > { %p666_p7 = pnand %p664_p5, %p661_p3 }
  0x1f   : > { %669 = shalt.err (!%p666_p7)
}
  0x20   : > { %s670_s9 = scalar_lea.vmem %s148_s26, 2048  ;;  %p678_p1 = scmp.lt.s32.totalorder %s148_s26, %s148_s26 }
  0x21   : > { %p671_p9 = scmp.ne.s32.totalorder %s148_s26, %s670_s9  ;;  %p679_p4 = scmp.lt.s32.totalorder %s670_s9, %s670_s9 }
  0x23   : > { %p673_p10 = pnand %p671_p9, %p659_p13  ;;  %p680_p8 = por %p679_p4, %p678_p1 }
  0x25   : > { %p674_p6 = pneg %p673_p10 }
  0x27   : > { %p681_p2 = pnand %p680_p8, %p674_p6 }
  0x29   : > { %684 = shalt.err (!%p681_p2)
}
  0x2a   : > { %s804_s10 = smov 128   ;;  %s805_s11 = smov 8  }
  0x2b   : > { %586 = dma.hbm_to_vmem [thread:$0]  (!%p894_p11), %s1069_s1, 2048, %s148_s26, [#allocation6], %s804_s10, %s804_s10, %s805_s11  }
  0x2c   : > { %p34_p1 = scmp.ge.s32.totalorder %s32_s28, 2  ;;  %s41_s25 = sadd.s32 1, %s789_s14 }
  0x2d   : > { %p48_p2 = scmp.ne.s32.totalorder %s789_s14, %s785_s13  ;;  %p49_p4 = scmp.eq.s32.totalorder %s801_s17, 0 }
  0x2e   : > { %s1097_s28 = smov (%p34_p1, %s32_s28), 0  ;;  %p1083_p8 = scmp.ne.s32.totalorder %s1077_s21, 0 }
  0x2f   : > { %p924_p6 = por %p49_p4, %p48_p2  ;;  %s36_s30 = ssub.s32 %s797_s16, %s1097_s28 }
  0x30   : > { %p930_p10 = por %p1083_p8, %p48_p2  ;;  %p596_p12 = scmp.lt.s32.totalorder %s801_s17, 2 }
  0x31   : > { %p39_p11 = scmp.eq.s32.totalorder %s36_s30, 0  ;;  %s164_s26 = sand.u32 1, %s789_s14  }
  0x32   : > { %s473_s4 = sshll.u32 %s164_s26, 4  ;;  %s488_s6 = sshll.u32 %s797_s16, 8 }
  0x33   : > { %s939_s5 = scalar_select %p39_p11, %s789_s14, %s41_s25  }
  0x34   : > { %s945_s9 = scalar_lea.hbm %s1068_s0, %s488_s6  ;;  %s168_s21 = scalar_lea.vmem [#allocation2], %s473_s4 }
  0x35   : > { %s177_s18 = sshll.u32 %s168_s21, 4  ;;  %p951_p13 = pnand %p596_p12, %p924_p6  ;;  %s947_s18 = int_to_ptr.vmem [resolvable:$true] %s177_s18 }
  0x36   : > { %s955_s25 = scalar_lea.sflag [#allocation3], %s164_s26  ;;  %s685_s30 = scalar_lea.hbm %s945_s9, 256 }
  0x37   : > { %p686_p0 = scmp.ne.s32.totalorder %s945_s9, %s685_s30  ;;  %p687_p3 = pneg %p951_p13 }
  0x38   : > { %s690_s29 = scalar_lea.hbm %s1068_s0, 512  ;;  %p691_p9 = scmp.lt.u32.totalorder %s945_s9, %s1068_s0 }
  0x39   : > { %p688_p5 = pnand %p687_p3, %p686_p0  ;;  %p692_p1 = scmp.lt.u32.totalorder %s690_s29, %s685_s30 }
  0x3a   : > { %p694_p4 = scmp.lt.u32.totalorder %s685_s30, %s945_s9 }
  0x3b   : > { %p689_p7 = pneg %p688_p5  ;;  %p693_p2 = por %p692_p1, %p691_p9 }
  0x3d   : > { %p695_p6 = por %p694_p4, %p693_p2 }
  0x3f   : > { %p696_p8 = pnand %p695_p6, %p689_p7 }
  0x41   : > { %699 = shalt.err (!%p696_p8)
}
  0x42   : > { %s700_s26 = scalar_lea.vmem %s947_s18, 256  ;;  %s806_s21 = smov [#allocation2]  }
  0x43   : > { %p701_p12 = scmp.ne.s32.totalorder %s947_s18, %s700_s26  ;;  %s705_s4 = sshll.u32 %s806_s21, 4  ;;  %s706_s4 = int_to_ptr.vmem [resolvable:$false] %s705_s4 }
  0x44   : > { %s707_s6 = scalar_lea.vmem %s706_s4, 512  ;;  %p708_p5 = scmp.lt.s32.totalorder %s947_s18, %s706_s4 }
  0x45   : > { %p703_p11 = pnand %p701_p12, %p687_p3  ;;  %p709_p9 = scmp.lt.s32.totalorder %s707_s6, %s700_s26 }
  0x47   : > { %p704_p0 = pneg %p703_p11  ;;  %p710_p1 = por %p709_p9, %p708_p5 }
  0x49   : > { %p711_p2 = pnand %p710_p1, %p704_p0 }
  0x4b   : > { %714 = shalt.err (!%p711_p2)
}
  0x4c   : > { %590 = dma.hbm_to_vmem [thread:$0]  (!%p951_p13), %s945_s9, 256, %s947_s18, %s955_s25, %s804_s10, %s804_s10, %s805_s11  }
  0x4d   : > { %p1086_p3 = scmp.ne.s32.totalorder %s1080_s24, 0 }
  0x4e   : > { %s989_s30 = sand.u32 (!%p1086_p3), 1, %s785_s13   ;;  %p1087_p7 = scmp.ne.s32.totalorder (!%p1086_p3), %s1078_s22, 0 }
  0x4f   : > { %189 = sbr.rel (%p1086_p3) target bundleno = 635 (0x27b), region = 32  ;;  %s477_s29 = sshll.u32 (!%p1086_p3), %s989_s30, 4 }
  0x50   : > { %s192_s7 = scalar_lea.sflag (!%p1086_p3), [#allocation3], %s989_s30  ;;  %s993_s8 = scalar_lea.vmem (!%p1086_p3), [#allocation2], %s477_s29 }
  0x56   : > { %768 = dma.done.wait (%p1087_p7), %s192_s7, 256  }
  0x57   : > { %770 = vsyncadd (%p1087_p7), %s192_s7, 4294967040  ;;  %p1088_p13 = scmp.ne.s32.totalorder %s1076_s20, 0 }
  0x59   : > { %772 = dma.done.wait (%p1088_p13), [#allocation6], 2048  }
  0x5a   : > { %774 = vsyncadd (%p1088_p13), [#allocation6], 4294965248  ;;  %v226_v0 = vld [vmem:[#allocation5] sm:$0xff]  ;;  %v227_v1 = vld [vmem:[#allocation5 + $0x8] sm:$0xff]  ;;  %s479_s20 = sshll.u32 %s989_s30, 5  ;;  %vm341_vm0 = vcmask 523264  }
  0x5b   : > { %v228_v2 = vld [vmem:[#allocation5 + $0x10] sm:$0xff]  ;;  %v543_v3 = vpack.c.bf16 %v227_v1, %v226_v0  ;;  %v229_v4 = vld [vmem:[#allocation5 + $0x18] sm:$0xff]  ;;  %v230_v6 = vld [vmem:[#allocation5 + $0x20] sm:$0xff]  ;;  %s807_s10 = smov 64   ;;  %s221_s11 = scalar_lea.vmem [#allocation7], %s479_s20 }
  0x5c   : > { %v547_v5 = vpack.c.bf16 %v229_v4, %v228_v2  ;;  %v231_v7 = vld [vmem:[#allocation5 + $0x28] sm:$0xff]  ;;  %v224_v9 = vld [vmem:[%s993_s8] sm:$0xff]  ;;  %v233_v11 = vld [vmem:[#allocation5 + $0x38] sm:$0xff]  ;;  %s371_s9 = sshll.u32 %s221_s11, 4  ;;  %s489_s18 = sshll.u32 %s793_s15, 9  ;;  %s1012_s9 = int_to_ptr.vmem [resolvable:$true] %s371_s9 }
  0x5d   : > { %544 = vmatprep.subr.bf16.mxu0 %v543_v3  ;;  %v551_v8 = vpack.c.bf16 %v231_v7, %v230_v6  ;;  %v232_v10 = vld [vmem:[#allocation5 + $0x30] sm:$0xff]  ;;  %540 = vmatprep.mubr.f32.mxu0 %v224_v9  ;;  %v234_v13 = vld [vmem:[#allocation5 + $0x40] sm:$0xff]  ;;  %v235_v14 = vld [vmem:[#allocation5 + $0x48] sm:$0xff]  ;;  %s1018_s26 = scalar_lea.hbm %s1071_s3, %s489_s18  ;;  %s356_s21 = scalar_lea.sflag [#allocation4], %s989_s30 }
  0x5e   : > { %546 = vmatpush3.bf16.msra.mxu0 %v543_v3  ;;  %v555_v12 = vpack.c.bf16 %v233_v11, %v232_v10  ;;  %v559_v15 = vpack.c.bf16 %v235_v14, %v234_v13  ;;  %v236_v16 = vld [vmem:[#allocation5 + $0x50] sm:$0xff]  ;;  %v237_v17 = vld [vmem:[#allocation5 + $0x58] sm:$0xff]  ;;  %v238_v19 = vld [vmem:[#allocation5 + $0x60] sm:$0xff]  ;;  %s715_s4 = scalar_lea.vmem %s1012_s9, 512  ;;  %s808_s15 = smov [#allocation7]  }
  0x5f   : > { %548 = vmatprep.subr.bf16.mxu0 %v547_v5  ;;  %v563_v18 = vpack.c.bf16 %v237_v17, %v236_v16  ;;  %v239_v20 = vld [vmem:[#allocation5 + $0x68] sm:$0xff]  ;;  %v240_v22 = vld [vmem:[#allocation5 + $0x70] sm:$0xff]  ;;  %v241_v23 = vld [vmem:[#allocation5 + $0x78] sm:$0xff]  ;;  %p716_p4 = scmp.ne.s32.totalorder %s1012_s9, %s715_s4  ;;  %s719_s6 = sshll.u32 %s808_s15, 4  ;;  %s720_s6 = int_to_ptr.vmem [resolvable:$false] %s719_s6 }
  0x60   : > { %v567_v21 = vpack.c.bf16 %v239_v20, %v238_v19  ;;  %v571_v24 = vpack.c.bf16 %v241_v23, %v240_v22  ;;  %v225_v25 = vld [vmem:[%s993_s8 + $0x8] sm:$0xff]  ;;  %v480_v37 = vld [vmem:[%s1070_s2] ss:$0 sm:$0xff]  ;;  %s721_s29 = scalar_lea.vmem %s720_s6, 1024  ;;  %p722_p12 = scmp.lt.s32.totalorder %s1012_s9, %s720_s6 }
  0x61   : > { %p717_p6 = pnand %p716_p4, %p930_p10  ;;  %p723_p11 = scmp.lt.s32.totalorder %s721_s29, %s715_s4 }
  0x62   : > { %550 = vmatpush3.bf16.msra.mxu0 %v547_v5 }
  0x63   : > { %552 = vmatprep.subr.bf16.mxu0 %v551_v8  ;;  %p718_p8 = pneg %p717_p6  ;;  %p724_p0 = por %p723_p11, %p722_p12 }
  0x65   : > { %p725_p5 = pnand %p724_p0, %p718_p8 }
  0x66   : > { %554 = vmatpush3.bf16.msra.mxu0 %v551_v8 }
  0x67   : > { %556 = vmatprep.subr.bf16.mxu0 %v555_v12 }
  0x6a   : > { %558 = vmatpush3.bf16.msra.mxu0 %v555_v12 }
  0x6b   : > { %560 = vmatprep.subr.bf16.mxu0 %v559_v15 }
  0x6e   : > { %562 = vmatpush3.bf16.msra.mxu0 %v559_v15 }
  0x6f   : > { %564 = vmatprep.subr.bf16.mxu0 %v563_v18 }
  0x72   : > { %566 = vmatpush3.bf16.msra.mxu0 %v563_v18 }
  0x73   : > { %568 = vmatprep.subr.bf16.mxu0 %v567_v21 }
  0x76   : > { %570 = vmatpush3.bf16.msra.mxu0 %v567_v21 }
  0x77   : > { %572 = vmatprep.subr.bf16.mxu0 %v571_v24 }
  0x7a   : > { %574 = vmatpush3.bf16.msra.mxu0 %v571_v24 }
  0x7d   : > { %541 = vmatmul.mubr.f32.vlgmr.msra.gmra.mrb[0].mxu0 %v225_v25 }
 0x150   : > { %v542_v26 = vpop.f32.mrb[0].mxu0 }
 0x151   : > { %v308_v27 = vpop.f32.mrb[1].mxu0  ;;  %v319_v29 = vmul.f32 %v542_v26, %v542_v26 }
 0x152   : > { %v318_v28 = vmul.f32 %v308_v27, %v308_v27 }
 0x154   : > { %320 = vadd.xlane.f32.xlu0 %v318_v28 }
 0x158   : > { %322 = vadd.xlane.f32.xlu0 %v319_v29 }
 0x1e1   : > { %v321_v30 = vpop.xlane.xlu0 %320 }
 0x1e2   : > { %v325_v31 = vmul.f32 0.0078125, %v321_v30 }
 0x1e4   : > { %v327_v32 = vadd.f32 1e-06, %v325_v31 }
 0x1e5   : > { %v323_v33 = vpop.xlane.xlu0 %322 }
 0x1e6   : > { %653 = vrsqrt.f32 %v327_v32  ;;  %v326_v34 = vmul.f32 0.0078125, %v323_v33 }
 0x1e8   : > { %v328_v35 = vadd.f32 1e-06, %v326_v34 }
 0x1ea   : > { %655 = vrsqrt.f32 %v328_v35 }
 0x1f0   : > { %v654_v36 = vpop.eup %653 }
 0x1f1   : > { %v331_v38 = vmul.f32 %v654_v36, %v308_v27 }
 0x1f3   : > { %v339_v39 = vmul.f32 %v480_v37, %v331_v38 }
 0x1f4   : > { %v656_v40 = vpop.eup %655 }
 0x1f5   : > { %346 = vrot.lane.b32.xlu1 %v339_v39, %s807_s10  ;;  %v332_v41 = vmul.f32 %v656_v40, %v542_v26  ;;  %342 = vst.msk [vmem:[%s221_s11] sm:$0xff] %vm341_vm0, %v339_v39 }
 0x1f7   : > { %v340_v42 = vmul.f32 %v480_v37, %v332_v41 }
 0x1f9   : > { %348 = vrot.lane.b32.xlu1 %v340_v42, %s807_s10  ;;  %343 = vst.msk [vmem:[%s221_s11 + $0x8] sm:$0xff] %vm341_vm0, %v340_v42 }
 0x267   : > { %v347_v43 = vpop.permute.xlu1 %346 }
 0x268   : > { %481 = vst.msk [vmem:[%s221_s11 + $0x10] sm:$0xff] %vm341_vm0, %v347_v43 }
 0x26b   : > { %v349_v44 = vpop.permute.xlu1 %348 }
 0x26c   : > { %482 = vst.msk [vmem:[%s221_s11 + $0x18] sm:$0xff] %vm341_vm0, %v349_v44 }
 0x26d   : > { %728 = shalt.err (!%p725_p5)
}
 0x26e   : > { %s729_s7 = scalar_lea.hbm %s1018_s26, 512  ;;  %s733_s22 = scalar_lea.hbm %s1071_s3, 1024 }
 0x26f   : > { %p730_p9 = scmp.ne.s32.totalorder %s1018_s26, %s729_s7  ;;  %p734_p3 = scmp.lt.u32.totalorder %s1018_s26, %s1071_s3 }
 0x270   : > { %p735_p7 = scmp.lt.u32.totalorder %s733_s22, %s729_s7  ;;  %p737_p4 = scmp.lt.u32.totalorder %s729_s7, %s1018_s26 }
 0x271   : > { %p731_p1 = pnand %p730_p9, %p930_p10 }
 0x272   : > { %p736_p13 = por %p735_p7, %p734_p3 }
 0x273   : > { %p732_p2 = pneg %p731_p1 }
 0x274   : > { %p738_p6 = por %p737_p4, %p736_p13 }
 0x276   : > { %p739_p8 = pnand %p738_p6, %p732_p2 }
 0x278   : > { %742 = shalt.err (!%p739_p8)
}
 0x279   : > { %s809_s11 = smov 128   ;;  %s810_s18 = smov 8  }
 0x27a   : > { %581 = dma.vmem_to_hbm [thread:$0]  (%p930_p10), %s1012_s9, 512, %s1018_s26, %s356_s21, %s809_s11, %s809_s11, %s810_s18  }
 0x27b PF: > { %s386_s19 = sand.u32 1, %s781_s12   ;;  %p1089_p12 = scmp.ne.s32.totalorder %s1079_s23, 0 }
 0x27c   : > { %p1090_p11 = scmp.ge.s32.totalorder %s801_s17, 2  ;;  %s387_s25 = scalar_lea.sflag [#allocation4], %s386_s19 }
 0x27e   : > { %p592_p0 = pnand %p1090_p11, %p1089_p12 }
 0x280   : > { %776 = dma.done.wait (!%p592_p0), %s387_s25, 512  }
 0x281   : > { %778 = vsyncadd (!%p592_p0), %s387_s25, 4294966784  ;;  %s20_s17 = sadd.s32 1, %s801_s17   ;;  %s1091_s12 = smov %s785_s13 }
 0x282   : > { %p17_p5 = scmp.ge.s32.totalorder %s20_s17, 4   ;;  %s1092_s13 = smov %s789_s14 }
 0x283   : > { %s1093_s14 = smov %s939_s5  ;;  %s1094_s15 = smov %s797_s16 }
 0x284   : > { %s1095_s16 = smov %s1097_s28  ;;  %19 = sbr.rel (!%p17_p5) target bundleno = 7 (0x7), region = 82 }
 0x28b   :  { %392 = vsyncpa [#allocation3], 1 }
 0x28c   :  { %394 = vsyncpa [#allocation3 + $0x1], 1 }
 0x28d   :  { %395 = vsyncpa [#allocation6], 1 }
 0x28e   :  { %396 = vsyncpa [#allocation4], 1 }
 0x28f   :  { %398 = vsyncpa [#allocation4 + $0x1], 1 }

</bundles_post_ra>
